<compile_context>
chip_gen: v5e
topology: v5e:2x2
jax: 0.10.0
libtpu: 0.0.40
codegen_flags: <defaults>
</compile_context>

<pallas_src>
import jax
import jax.numpy as jnp
from jax.experimental import pallas as pl
from jax.experimental.pallas import tpu as pltpu


def _round_up(n, m):
    return ((n + m - 1) // m) * m


def _vmem_capacity_bytes():
    """Physical per-core VMEM; conservative (v7x) fallback if the query fails."""
    try:
        return int(pltpu.get_tpu_info().vmem_capacity_bytes)
    except Exception:
        return 64 * 2**20


def _ae_kernel(x_ref, ew_ref, eb_ref, dw_ref, db_ref, rep_ref, xhat_ref,
               rep_f32):
    """Fused encoder (at j==0) + one decoder column slab per grid step.

    rep             = relu(x @ enc_w + enc_b)              (once per batch tile)
    x_hat[:, slab]  = sigmoid(rep @ dec_w[:, slab] + dec_b[slab])

    Both matmuls hit the MXU with f32 accumulation; bias add / ReLU on the
    VPU and sigmoid on the EUP are done in f32, casting to the I/O dtype only
    at the store (bf16-I/O safe on v5e, which has no bf16 VPU/EUP).
    """
    @pl.when(pl.program_id(1) == 0)
    def _encode():
        h = jnp.dot(x_ref[...], ew_ref[...],
                    preferred_element_type=jnp.float32)
        h = jnp.maximum(h + eb_ref[...].astype(jnp.float32), 0.0)
        rep_f32[...] = h                       # persists across the j axis
        rep_ref[...] = h.astype(rep_ref.dtype)

    o = jnp.dot(rep_f32[...].astype(dw_ref.dtype), dw_ref[...],
                preferred_element_type=jnp.float32)
    o = o + db_ref[...].astype(jnp.float32)
    xhat_ref[...] = jax.nn.sigmoid(o).astype(xhat_ref.dtype)


def _vmem_need_bytes(tb, tn, d_in, hidden, bytes_el):
    """Estimate VMEM use: 2x buffers for every pipelined operand + f32 temps."""
    bufs = 2 * bytes_el * (
        tb * d_in          # x tile
        + d_in * hidden    # enc_w (resident, still double-buffered)
        + hidden           # enc_b
        + hidden * tn      # dec_w slab
        + tn               # dec_b slab
        + tb * hidden      # rep tile
        + tb * tn          # x_hat slab
    )
    scratch = 4 * tb * (2 * hidden + 2 * tn)   # rep_f32 scratch + f32 temps
    return bufs + scratch


def _select_tiles(batch, d_in, hidden, bytes_el, budget):
    """Pick (tb, tn): batch-row tile and decoder-output-column tile."""
    # Batch tile: MXU-native 256 rows when the batch allows; guarantee >= 2
    # batch grid steps when batch >= 256 so the "parallel" axis can shard
    # across v7x's two TensorCores.
    if batch > 256:
        tb = 256
    elif batch == 256:
        tb = 128
    else:
        tb = batch            # full-extent block: always legal

    tn = d_in                 # full-extent block: always legal

    while _vmem_need_bytes(tb, tn, d_in, hidden, bytes_el) > budget:
        if tn > 512:
            # Shrink the decoder column slab first (keeps batch tiles big);
            # keep it a multiple of 128 so partial last slabs remain legal.
            tn = max(512, ((tn // 2) // 128) * 128)
        elif tb > 8:
            if tb == batch:
                tb = max(8, _round_up(batch // 2, 8))
            else:
                tb = max(8, ((tb // 2) // 8) * 8)
        else:
            break             # smallest sensible tiles; let Mosaic try
    return tb, tn


def temporal_categorical_autoencoder(x, enc_w, enc_b, dec_w, dec_b,
                                     *, vmem_budget_bytes=None):
    """Forward pass matching TemporalCategoricalAutoencoder.forward.

    x:     (batch, seq_len, n_features)
    enc_w: (S*F, H)   enc_b: (H,) or (1, H)
    dec_w: (H, S*F)   dec_b: (S*F,) or (1, S*F)
    Returns (rep, x_hat) of shapes (batch, H), (batch, S*F) in x.dtype.
    bf16 I/O is supported; all accumulation / elementwise math is f32.
    """
    batch, seq_len, n_feat = x.shape
    d_in = seq_len * n_feat
    hidden = enc_w.shape[1]
    assert enc_w.shape == (d_in, hidden), (enc_w.shape, d_in, hidden)
    assert dec_w.shape == (hidden, d_in), (dec_w.shape, hidden, d_in)

    # nn.Module glue: x.view(-1, seq_len * n_features); contiguous reshape.
    x_flat = x.reshape(batch, d_in)
    enc_b = enc_b.reshape(1, hidden)
    dec_b = dec_b.reshape(1, d_in)

    io_dtype = x.dtype
    bytes_el = jnp.dtype(io_dtype).itemsize

    capacity = _vmem_capacity_bytes()
    budget = (vmem_budget_bytes if vmem_budget_bytes is not None
              else int(0.8 * capacity))
    tb, tn = _select_tiles(batch, d_in, hidden, bytes_el, budget)

    grid = (pl.cdiv(batch, tb), pl.cdiv(d_in, tn))

    in_specs = [
        pl.BlockSpec((tb, d_in), lambda i, j: (i, 0)),       # x: once per batch tile
        pl.BlockSpec((d_in, hidden), lambda i, j: (0, 0)),   # enc_w: resident
        pl.BlockSpec((1, hidden), lambda i, j: (0, 0)),      # enc_b: resident
        pl.BlockSpec((hidden, tn), lambda i, j: (0, j)),     # dec_w: column slab
        pl.BlockSpec((1, tn), lambda i, j: (0, j)),          # dec_b: column slab
    ]
    out_specs = (
        pl.BlockSpec((tb, hidden), lambda i, j: (i, 0)),     # rep (revisited over j)
        pl.BlockSpec((tb, tn), lambda i, j: (i, j)),         # x_hat
    )
    out_shape = (
        jax.ShapeDtypeStruct((batch, hidden), io_dtype),
        jax.ShapeDtypeStruct((batch, d_in), io_dtype),
    )

    # Advisory cost estimate from logical sizes (sigmoid = exp + reciprocal).
    cost = pl.CostEstimate(
        flops=4 * batch * d_in * hidden,
        transcendentals=2 * batch * d_in,
        bytes_accessed=bytes_el * (2 * batch * d_in + batch * hidden
                                   + 2 * d_in * hidden + hidden + d_in),
    )

    need = _vmem_need_bytes(tb, tn, d_in, hidden, bytes_el)
    vmem_limit = int(max(32 << 20,
                         min(capacity - (2 << 20),
                             max(need + (8 << 20), 32 << 20))))

    rep, x_hat = pl.pallas_call(
        _ae_kernel,
        grid=grid,
        in_specs=in_specs,
        out_specs=out_specs,
        out_shape=out_shape,
        scratch_shapes=[pltpu.VMEM((tb, hidden), jnp.float32)],
        compiler_params=pltpu.CompilerParams(
            dimension_semantics=("parallel", "arbitrary"),
            vmem_limit_bytes=vmem_limit,
        ),
        cost_estimate=cost,
    )(x_flat, enc_w, enc_b, dec_w, dec_b)

    return rep, x_hat


def _reference(x, enc_w, enc_b, dec_w, dec_b):
    """Pure-JAX reference for correctness checking."""
    b, s, f = x.shape
    xf = x.reshape(b, s * f)
    rep = jnp.maximum(xf @ enc_w + enc_b.reshape(1, -1), 0.0)
    x_hat = jax.nn.sigmoid(rep @ dec_w + dec_b.reshape(1, -1))
    return rep, x_hat


if __name__ == "__main__":
    # Small shapes consistent with the module: (batch, seq_len, n_features)
    batch, seq_len, n_feat = 2, 8, 16
    d_in = seq_len * n_feat          # 128
    hidden = 32

    key = jax.random.PRNGKey(0)
    kx, kew, keb, kdw, kdb = jax.random.split(key, 5)

    x = jax.random.uniform(kx, (batch, seq_len, n_feat), dtype=jnp.float32)
    enc_w = jax.random.normal(kew, (d_in, hidden), dtype=jnp.float32) * 0.1
    enc_b = jax.random.normal(keb, (hidden,), dtype=jnp.float32) * 0.1
    dec_w = jax.random.normal(kdw, (hidden, d_in), dtype=jnp.float32) * 0.1
    dec_b = jax.random.normal(kdb, (d_in,), dtype=jnp.float32) * 0.1

    rep_ref, x_hat_ref = _reference(x, enc_w, enc_b, dec_w, dec_b)

    # ---- f32 I/O path ----------------------------------------------------
    rep, x_hat = jax.jit(temporal_categorical_autoencoder)(
        x, enc_w, enc_b, dec_w, dec_b)
    jax.block_until_ready((rep, x_hat))
    assert rep.shape == (batch, hidden) and rep.dtype == jnp.float32
    assert x_hat.shape == (batch, d_in) and x_hat.dtype == jnp.float32
    # Tolerance allows for MXU bf16-pass f32 matmul lowering differences.
    assert jnp.allclose(rep, rep_ref, atol=2e-2, rtol=2e-2)
    assert jnp.allclose(x_hat, x_hat_ref, atol=2e-2, rtol=2e-2)

    # ---- bf16 I/O path (f32 accumulation inside the kernel) ---------------
    bf = lambda a: a.astype(jnp.bfloat16)
    rep16, x_hat16 = jax.jit(temporal_categorical_autoencoder)(
        bf(x), bf(enc_w), bf(enc_b), bf(dec_w), bf(dec_b))
    jax.block_until_ready((rep16, x_hat16))
    assert rep16.dtype == jnp.bfloat16 and x_hat16.dtype == jnp.bfloat16
    assert jnp.allclose(rep16.astype(jnp.float32), rep_ref, atol=6e-2, rtol=6e-2)
    assert jnp.allclose(x_hat16.astype(jnp.float32), x_hat_ref, atol=6e-2, rtol=6e-2)

    print("KERNEL_OK")
</pallas_src>

<mosaic_0001>
module attributes {stable_mosaic.version = 11 : i64} {
  func.func @_ae_kernel(%arg0: i32, %arg1: i32, %arg2: memref<2x128xf32, #tpu.memory_space<vmem>>, %arg3: memref<128x32xf32, #tpu.memory_space<vmem>>, %arg4: memref<1x32xf32, #tpu.memory_space<vmem>>, %arg5: memref<32x128xf32, #tpu.memory_space<vmem>>, %arg6: memref<1x128xf32, #tpu.memory_space<vmem>>, %arg7: memref<2x32xf32, #tpu.memory_space<vmem>>, %arg8: memref<2x128xf32, #tpu.memory_space<vmem>>, %arg9: memref<2x32xf32, #tpu.memory_space<vmem>>) attributes {dimension_semantics = [#tpu.dimension_semantics<parallel>, #tpu.dimension_semantics<arbitrary>], iteration_bounds = array<i64: 1, 1>, scalar_prefetch = 0 : i64, scratch_operands = 1 : i64, tpu.core_type = #tpu.core_type<tc>, window_params = [{transform_indices = @transform_0, window_bounds = array<i64: 2, 128>}, {pipeline_mode = #tpu.pipeline_mode<synchronous>, transform_indices = @transform_1, window_bounds = array<i64: 128, 32>}, {pipeline_mode = #tpu.pipeline_mode<synchronous>, transform_indices = @transform_2, window_bounds = array<i64: 1, 32>}, {transform_indices = @transform_3, window_bounds = array<i64: 32, 128>}, {transform_indices = @transform_4, window_bounds = array<i64: 1, 128>}, {transform_indices = @transform_5, window_bounds = array<i64: 2, 32>}, {transform_indices = @transform_6, window_bounds = array<i64: 2, 128>}]} {
    %c0_i32 = arith.constant 0 : i32
    %0 = arith.cmpi eq, %arg1, %c0_i32 : i32
    %1 = arith.extui %0 : i1 to i32
    %c0_i32_0 = arith.constant 0 : i32
    %2 = arith.cmpi ne, %1, %c0_i32_0 : i32
    scf.if %2 {
      %c0_9 = arith.constant 0 : index
      %c0_10 = arith.constant 0 : index
      %15 = vector.load %arg2[%c0_9, %c0_10] : memref<2x128xf32, #tpu.memory_space<vmem>>, vector<2x128xf32>
      %c0_11 = arith.constant 0 : index
      %c0_12 = arith.constant 0 : index
      %16 = vector.load %arg3[%c0_11, %c0_12] : memref<128x32xf32, #tpu.memory_space<vmem>>, vector<128x32xf32>
      %cst_13 = arith.constant dense<0.000000e+00> : vector<2x32xf32>
      %17 = tpu.matmul %15, %16, %cst_13 {dimension_numbers = #tpu.dot_dimension_numbers<[1], [0], [0], [1], [0, 0, 1, 1], [], []>} : vector<2x128xf32>, vector<128x32xf32>, vector<2x32xf32> -> vector<2x32xf32>
      %c0_14 = arith.constant 0 : index
      %c0_15 = arith.constant 0 : index
      %18 = vector.load %arg4[%c0_14, %c0_15] : memref<1x32xf32, #tpu.memory_space<vmem>>, vector<1x32xf32>
      %19 = vector.broadcast %18 : vector<1x32xf32> to vector<2x32xf32>
      %20 = arith.addf %17, %19 : vector<2x32xf32>
      %cst_16 = arith.constant 0.000000e+00 : f32
      %21 = vector.broadcast %cst_16 : f32 to vector<2x32xf32>
      %22 = arith.maximumf %20, %21 : vector<2x32xf32>
      %c0_17 = arith.constant 0 : index
      %c0_18 = arith.constant 0 : index
      %23 = vector.load %arg9[%c0_17, %c0_18] : memref<2x32xf32, #tpu.memory_space<vmem>>, vector<2x32xf32>
      tpu.vector_store %arg9[%c0_17, %c0_18], %22 {strides = array<i32>} : memref<2x32xf32, #tpu.memory_space<vmem>>, vector<2x32xf32>,
      %c0_19 = arith.constant 0 : index
      %c0_20 = arith.constant 0 : index
      %24 = vector.load %arg7[%c0_19, %c0_20] : memref<2x32xf32, #tpu.memory_space<vmem>>, vector<2x32xf32>
      tpu.vector_store %arg7[%c0_19, %c0_20], %22 {strides = array<i32>} : memref<2x32xf32, #tpu.memory_space<vmem>>, vector<2x32xf32>,
    } else {
    }
    %c0 = arith.constant 0 : index
    %c0_1 = arith.constant 0 : index
    %3 = vector.load %arg9[%c0, %c0_1] : memref<2x32xf32, #tpu.memory_space<vmem>>, vector<2x32xf32>
    %c0_2 = arith.constant 0 : index
    %c0_3 = arith.constant 0 : index
    %4 = vector.load %arg5[%c0_2, %c0_3] : memref<32x128xf32, #tpu.memory_space<vmem>>, vector<32x128xf32>
    %cst = arith.constant dense<0.000000e+00> : vector<2x128xf32>
    %5 = tpu.matmul %3, %4, %cst {dimension_numbers = #tpu.dot_dimension_numbers<[1], [0], [0], [1], [0, 0, 1, 1], [], []>} : vector<2x32xf32>, vector<32x128xf32>, vector<2x128xf32> -> vector<2x128xf32>
    %c0_4 = arith.constant 0 : index
    %c0_5 = arith.constant 0 : index
    %6 = vector.load %arg6[%c0_4, %c0_5] : memref<1x128xf32, #tpu.memory_space<vmem>>, vector<1x128xf32>
    %7 = vector.broadcast %6 : vector<1x128xf32> to vector<2x128xf32>
    %8 = arith.addf %5, %7 : vector<2x128xf32>
    %9 = arith.negf %8 : vector<2x128xf32>
    %10 = math.exp %9 : vector<2x128xf32>
    %cst_6 = arith.constant 1.000000e+00 : f32
    %11 = vector.broadcast %cst_6 : f32 to vector<2x128xf32>
    %12 = arith.addf %11, %10 : vector<2x128xf32>
    %13 = arith.divf %11, %12 : vector<2x128xf32>
    %c0_7 = arith.constant 0 : index
    %c0_8 = arith.constant 0 : index
    %14 = vector.load %arg8[%c0_7, %c0_8] : memref<2x128xf32, #tpu.memory_space<vmem>>, vector<2x128xf32>
    tpu.vector_store %arg8[%c0_7, %c0_8], %13 {strides = array<i32>} : memref<2x128xf32, #tpu.memory_space<vmem>>, vector<2x128xf32>,
    return
  }
  func.func @transform_0(%arg0: i32, %arg1: i32) -> (i32, i32) {
    %c0_i32 = arith.constant 0 : i32
    %c0_i32_0 = arith.constant 0 : i32
    return %arg0, %c0_i32 : i32, i32
  }
  func.func @transform_1(%arg0: i32, %arg1: i32) -> (i32, i32) {
    %c0_i32 = arith.constant 0 : i32
    %c0_i32_0 = arith.constant 0 : i32
    %c0_i32_1 = arith.constant 0 : i32
    return %c0_i32, %c0_i32_0 : i32, i32
  }
  func.func @transform_2(%arg0: i32, %arg1: i32) -> (i32, i32) {
    %c0_i32 = arith.constant 0 : i32
    %c0_i32_0 = arith.constant 0 : i32
    %c0_i32_1 = arith.constant 0 : i32
    return %c0_i32, %c0_i32_0 : i32, i32
  }
  func.func @transform_3(%arg0: i32, %arg1: i32) -> (i32, i32) {
    %c0_i32 = arith.constant 0 : i32
    %c0_i32_0 = arith.constant 0 : i32
    return %c0_i32, %arg1 : i32, i32
  }
  func.func @transform_4(%arg0: i32, %arg1: i32) -> (i32, i32) {
    %c0_i32 = arith.constant 0 : i32
    %c0_i32_0 = arith.constant 0 : i32
    return %c0_i32, %arg1 : i32, i32
  }
  func.func @transform_5(%arg0: i32, %arg1: i32) -> (i32, i32) {
    %c0_i32 = arith.constant 0 : i32
    %c0_i32_0 = arith.constant 0 : i32
    return %arg0, %c0_i32 : i32, i32
  }
  func.func @transform_6(%arg0: i32, %arg1: i32) -> (i32, i32) {
    %c0_i32 = arith.constant 0 : i32
    return %arg0, %arg1 : i32, i32
  }
}

</mosaic_0001>

<bundles_post_ra>
// kernel: temporal_categorical_autoencoder.1
= control target key start
LH: loop header
LB: loop body
LE: loop exit
PB: predicated region body
PF: predicated region fallthrough
CT: control target
= control target key end

     0   :  { %12 = vsyncpa [#allocation4], 0  ;;  %s332_s0 = inlined_call_operand.vmem [shape: f32[2,128], index: 0, kind: input, shape index: {}]   ;;  %s333_s1 = inlined_call_operand.vmem [shape: f32[128,32], index: 1, kind: input, shape index: {}]   ;;  %s334_s2 = inlined_call_operand.vmem [shape: f32[1,32], index: 2, kind: input, shape index: {}]   ;;  %s335_s3 = inlined_call_operand.vmem [shape: f32[32,128], index: 3, kind: input, shape index: {}]   ;;  %s336_s4 = inlined_call_operand.vmem [shape: f32[1,128], index: 4, kind: input, shape index: {}]   ;;  %s337_s5 = inlined_call_operand.hbm [shape: f32[2,32], index: 5, kind: output, shape index: {0}]   ;;  %s338_s6 = inlined_call_operand.hbm [shape: f32[2,128], index: 6, kind: output, shape index: {1}]  }
   0x1   :  { %v44_v0 = vld [vmem:[%s333_s1 + $0x78] sm:$0xff]  ;;  %v43_v1 = vld [vmem:[%s333_s1 + $0x70] sm:$0xff]  ;;  %v42_v2 = vld [vmem:[%s333_s1 + $0x68] sm:$0xff] }
   0x2   :  { %49 = vmatpush.msra.mxu0 %v44_v0  ;;  %v41_v3 = vld [vmem:[%s333_s1 + $0x60] sm:$0xff]  ;;  %v40_v4 = vld [vmem:[%s333_s1 + $0x58] sm:$0xff] }
   0x4   :  { %50 = vmatpush.msra.mxu0 %v43_v1 }
   0x6   :  { %51 = vmatpush.msra.mxu0 %v42_v2 }
   0x7   :  { %13 = vsyncpa [#allocation6], 0  ;;  %v39_v5 = vld [vmem:[%s333_s1 + $0x50] sm:$0xff]  ;;  %v38_v6 = vld [vmem:[%s333_s1 + $0x48] sm:$0xff]  ;;  %vm70_vm0 = vcmask 254976   ;;  %vm82_vm1 = vcmask 261120  }
   0x8   :  { %52 = vmatpush.msra.mxu0 %v41_v3  ;;  %v37_v7 = vld [vmem:[%s333_s1 + $0x40] sm:$0xff]  ;;  %v36_v8 = vld [vmem:[%s333_s1 + $0x38] sm:$0xff]  ;;  %v35_v9 = vld [vmem:[%s333_s1 + $0x30] sm:$0xff]  ;;  %s133_s17 = sshll.u32 %s337_s5, 4  ;;  %s221_s5 = smov [#allocation5]   ;;  %s134_s17 = int_to_ptr.hbm [resolvable:$true] %s133_s17 }
   0x9   :  { %v34_v10 = vld [vmem:[%s333_s1 + $0x28] sm:$0xff]  ;;  %v33_v11 = vld [vmem:[%s333_s1 + $0x20] sm:$0xff]  ;;  %v32_v12 = vld [vmem:[%s333_s1 + $0x18] sm:$0xff]  ;;  %s142_s20 = sshll.u32 %s221_s5, 4  ;;  %s143_s20 = int_to_ptr.vmem [resolvable:$true] %s142_s20 }
   0xa   :  { %53 = vmatpush.msra.mxu0 %v40_v4  ;;  %v31_v13 = vld [vmem:[%s333_s1 + $0x10] sm:$0xff]  ;;  %v30_v14 = vld [vmem:[%s333_s1 + $0x8] sm:$0xff]  ;;  %v29_v15 = vld [vmem:[%s333_s1] sm:$0xff] }
   0xb   :  { %v28_v16 = vld [vmem:[%s332_s0] sm:$0x3]  ;;  %v77_v17 = vld [vmem:[%s335_s3 + $0x18] sm:$0xff]  ;;  %v76_v18 = vld [vmem:[%s335_s3 + $0x10] sm:$0xff] }
   0xc   :  { %54 = vmatpush.msra.mxu0 %v39_v5  ;;  %98 = vmatpush.msra.mxu1 %v77_v17  ;;  %v75_v19 = vld [vmem:[%s335_s3 + $0x8] sm:$0xff]  ;;  %v74_v20 = vld [vmem:[%s335_s3] sm:$0xff]  ;;  %s220_s3 = smov [#allocation3]  }
   0xd   :  { %v162_v21 = vld [vmem:[%s334_s2] ss:$0 sm:$0xff]  ;;  %s131_s18 = sshll.u32 %s220_s3, 4  ;;  %s132_s18 = int_to_ptr.vmem [resolvable:$true] %s131_s18 }
   0xe   :  { %55 = vmatpush.msra.mxu0 %v38_v6  ;;  %99 = vmatpush.msra.mxu1 %v76_v18  ;;  %v163_v26 = vld [vmem:[%s336_s4] ss:$0 sm:$0xff]  ;;  %s144_s4 = sshll.u32 %s338_s6, 4  ;;  %s145_s4 = int_to_ptr.hbm [resolvable:$true] %s144_s4 }
  0x10   :  { %56 = vmatpush.msra.mxu0 %v37_v7  ;;  %100 = vmatpush.msra.mxu1 %v75_v19 }
  0x12   :  { %57 = vmatpush.msra.mxu0 %v36_v8  ;;  %101 = vmatpush.msra.mxu1 %v74_v20 }
  0x14   :  { %58 = vmatpush.msra.mxu0 %v35_v9 }
  0x16   :  { %59 = vmatpush.msra.mxu0 %v34_v10 }
  0x18   :  { %60 = vmatpush.msra.mxu0 %v33_v11 }
  0x1a   :  { %61 = vmatpush.msra.mxu0 %v32_v12 }
  0x1c   :  { %62 = vmatpush.msra.mxu0 %v31_v13 }
  0x1e   :  { %63 = vmatpush.msra.mxu0 %v30_v14 }
  0x20   :  { %64 = vmatpush.msra.mxu0 %v29_v15 }
  0x21   :  { %65 = vmatmul.f32.vlgmr.msra.gmra.mxu0 %v28_v16 }
  0x9e   :  { %v66_v22 = vpop.f32.mrf.mxu0 }
  0x9f   :  { %v67_v23 = vadd.f32 %v162_v21, %v66_v22 }
  0xa1   :  { %v69_v24 = vmax.f32 %v67_v23, 0.0 }
  0xa3   :  { %71 = vst.msk [vmem:[#allocation2] sm:$0x3] %vm70_vm0, %v69_v24 }
  0xa4   :  { %72 = vst.msk [vmem:[#allocation3] sm:$0x3] %vm70_vm0, %v69_v24 }
  0xa5   :  { %136 = dma.vmem_to_hbm [thread:$0]  %s132_s18, 32, %s134_s17, [#allocation4]  }
  0xaa   :  { %v73_v25 = vld [vmem:[#allocation2] sm:$0x3] }
  0xab   :  { %158 = vmatmul.msk.f32.vlgmr.msra.gmra.mxu1 %vm82_vm1, %v73_v25 }
 0x128   :  { %v103_v27 = vpop.f32.mrf.mxu1 }
 0x129   :  { %v104_v28 = vadd.f32 %v163_v26, %v103_v27 }
 0x12b   :  { %v159_v29 = vmul.f32 -1.442695, %v104_v28 }
 0x12d   :  { %164 = vpow2.f32 %v159_v29 }
 0x133   :  { %v165_v30 = vpop.eup %164 }
 0x134   :  { %v109_v31 = vadd.f32 1.0, %v165_v30 }
 0x136   :  { %166 = vrcp.f32 %v109_v31  ;;  %v121_v35 = vand.u32 2147483648, %v109_v31  ;;  %v119_v37 = vand.u32 2147483647, %v109_v31  ;;  %vm115_vm3 = vweird.f32 %v109_v31 }
 0x138   :  { %v122_v39 = vor.u32 1.1754944e-38, %v121_v35  ;;  %vm120_vm5 = vcmp.eq.f32.partialorder %v119_v37, 8.507059e+37 }
 0x13c   :  { %v167_v32 = vpop.eup %166 }
 0x13d   :  { %v111_v33 = vmul.f32 %v167_v32, %v109_v31  ;;  %vm116_vm2 = vweird.f32 %v167_v32 }
 0x13e   :  { %vm117_vm4 = vmor %vm115_vm3, %vm116_vm2 }
 0x13f   :  { %v112_v34 = vsub.f32 1.0, %v111_v33 }
 0x141   :  { %v113_v36 = vmul.f32 %v167_v32, %v112_v34 }
 0x143   :  { %v114_v38 = vadd.f32 %v167_v32, %v113_v36 }
 0x145   :  { %v118_v40 = vsel %vm117_vm4, %v167_v32, %v114_v38 }
 0x146   :  { %v123_v41 = vsel %vm120_vm5, %v122_v39, %v118_v40 }
 0x147   :  { %125 = vst [vmem:[#allocation5] sm:$0x3] %v123_v41 }
 0x148   :  { %147 = dma.vmem_to_hbm [thread:$0]  %s143_s20, 32, %s145_s4, [#allocation6]  }
 0x149   :  { %216 = dma.done.wait [#allocation4], 32  }
 0x14a   :  { %217 = vsyncadd [#allocation4], 4294967264 }
 0x14b   :  { %218 = dma.done.wait [#allocation6], 32  }
 0x14c   :  { %219 = vsyncadd [#allocation6], 4294967264 }
 0x14d   :  { %156 = vsyncpa [#allocation4], 1 }
 0x14e   :  { %157 = vsyncpa [#allocation6], 1 }

</bundles_post_ra>
